<compile_context>
chip_gen: v7x
topology: tpu7x:2x2x1
jax: 0.10.0
libtpu: 0.0.40
codegen_flags: <defaults>
</compile_context>

<pallas_src>
import jax
import jax.numpy as jnp
from jax.experimental import pallas as pl
from jax.experimental.pallas import tpu as pltpu


def _projection_kernel(x_ref, w_ref, o_ref):
    """x_ref: (TM, TK) activations; w_ref: (TK, G) fused weights;
    o_ref: (TM, G) f32 accumulator, resident across the K grid axis."""
    k = pl.program_id(1)
    partial = jnp.dot(x_ref[...], w_ref[...], preferred_element_type=jnp.float32)

    @pl.when(k == 0)
    def _():
        o_ref[...] = partial            # first K step: direct write, no zero-init

    @pl.when(k > 0)
    def _():
        o_ref[...] = o_ref[...] + partial


def _vmem_capacity_bytes():
    try:
        return int(pltpu.get_tpu_info().vmem_capacity_bytes)
    except Exception:
        return 64 << 20  # conservative fallback (v7x per-TensorCore VMEM)


def _choose_tiles(m, hw, x_itemsize, vmem_cap):
    """Pick (TM, TK).  `hw` is already a multiple of 128 (or the full, small extent)."""
    # Contraction tile: as large as practical but a clean divisor of hw so the
    # K axis is never ragged (a ragged K block would dot over unspecified data).
    if hw <= 4096:
        tk = hw
    else:
        tk = 128
        for cand in (4096, 2048, 1024, 512, 256):
            if hw % cand == 0:
                tk = cand
                break

    # Row tile: rows are independent ("parallel" axis).  Keep the
    # double-buffered x tile within ~45% of VMEM and keep >= 2 row tiles when
    # M > 128 so both v7x TensorCores get work (no effect on 1-TC chips).
    if m <= 128:
        tm = m                               # single full-extent block
    else:
        budget = int(vmem_cap * 0.45)
        tm = 2048
        while tm > 128 and 2 * tm * tk * x_itemsize > budget:
            tm //= 2
        while tm > 128 and -(-m // tm) < 2:  # ceil-div
            tm //= 2
    return tm, tk


def _from_cartesian_project(x, weights_list):
    """Fused einsum('...chw,hwg->...cg') for several weight tensors sharing x.

    x:            (..., H, W)
    weights_list: list of (H, W, Gi)
    returns:      list of (..., Gi) float32
    """
    *lead, H, W = x.shape
    HW = H * W
    M = 1
    for d in lead:
        M *= d

    gs = []
    for w in weights_list:
        assert w.shape[0] == H and w.shape[1] == W, "spatial dims mismatch"
        gs.append(int(w.shape[-1]))
    G = sum(gs)

    # Dtype hygiene: run the MXU in the activation dtype (bf16 stays bf16);
    # accumulate in f32 via preferred_element_type.
    if jnp.issubdtype(x.dtype, jnp.floating):
        compute_dtype = x.dtype
    else:
        compute_dtype = jnp.float32
        x = x.astype(compute_dtype)

    # Fuse all weight matrices along G: one matmul + one accumulator per step.
    w_fused = jnp.concatenate(
        [wi.reshape(HW, gi).astype(compute_dtype) for wi, gi in zip(weights_list, gs)],
        axis=-1)

    x2 = x.reshape(M, HW)  # contiguous reshape: no data movement

    # Pad the contraction axis to a multiple of 128 so it can be tiled
    # uniformly (zero rows in the weights contribute nothing to the dot).
    HW_pad = ((HW + 127) // 128) * 128 if HW % 128 else HW
    if HW_pad != HW:
        # TODO(synk): the x pad is an extra HBM copy; could instead mask the
        # last K block inside the kernel to avoid it.
        x2 = jnp.pad(x2, ((0, 0), (0, HW_pad - HW)))
        w_fused = jnp.pad(w_fused, ((0, HW_pad - HW), (0, 0)))

    vmem_cap = _vmem_capacity_bytes()
    x_itemsize = jnp.dtype(compute_dtype).itemsize
    TM, TK = _choose_tiles(M, HW_pad, x_itemsize, vmem_cap)
    grid = (pl.cdiv(M, TM), pl.cdiv(HW_pad, TK))

    # Double-buffered x / w tiles + resident f32 output blocks, plus headroom.
    needed = 2 * TM * TK * x_itemsize + 2 * TK * G * x_itemsize + 2 * TM * G * 4
    vmem_limit = min(int(vmem_cap * 0.9), max(32 << 20, needed + (8 << 20)))

    cost = pl.CostEstimate(
        flops=2 * M * HW_pad * G,
        transcendentals=0,
        bytes_accessed=(M * HW_pad * x_itemsize          # x read once
                        + grid[0] * HW_pad * G * x_itemsize  # weights per row tile
                        + M * G * 4),                    # output write
    )

    out = pl.pallas_call(
        _projection_kernel,
        out_shape=jax.ShapeDtypeStruct((M, G), jnp.float32),
        grid_spec=pltpu.PrefetchScalarGridSpec(
            num_scalar_prefetch=0,
            grid=grid,
            in_specs=[
                pl.BlockSpec((TM, TK), lambda i, k: (i, k)),   # activations
                pl.BlockSpec((TK, G), lambda i, k: (k, 0)),    # fused weights
            ],
            out_specs=pl.BlockSpec((TM, G), lambda i, k: (i, 0)),
        ),
        compiler_params=pltpu.CompilerParams(
            # Row tiles are independent -> shard across TCs on v7x;
            # contraction axis is a reduction -> arbitrary (last).
            dimension_semantics=("parallel", "arbitrary"),
            vmem_limit_bytes=vmem_limit,
        ),
        cost_estimate=cost,
    )(x2, w_fused)

    # Split the fused (M, Gn+Gf+...) output back into per-weight outputs
    # (tiny arrays; wrapper-side slice is negligible).
    outs = []
    off = 0
    for gi in gs:
        outs.append(out[:, off:off + gi].reshape(*lead, gi))
        off += gi
    return outs


class FromCartesianLayer:
    """JAX/Pallas port of the PyTorch FromCartesianLayer forward pass."""

    def __init__(self, node_weights, face_weights,
                 node_face_slices=(slice(None), slice(None))):
        assert node_weights.ndim == 3, "Node weights need three dimensions"
        assert face_weights.ndim == 3, "Face weights need three dimensions"
        # Stored f32 (as in PyTorch); cast to activation dtype at call time.
        self.node_weights = jnp.asarray(node_weights, dtype=jnp.float32)
        self.face_weights = jnp.asarray(face_weights, dtype=jnp.float32)
        self.node_face_slices = node_face_slices

    def __call__(self, input_tensor):
        sl_node, sl_face = self.node_face_slices
        x_node = input_tensor[..., sl_node, :, :]
        x_face = input_tensor[..., sl_face, :, :]
        if sl_node == sl_face:
            # Default case: both projections consume the same channels ->
            # fuse them into a single pallas_call with concatenated weights
            # (one read of the big input, one matmul per grid step).
            out_node, out_face = _from_cartesian_project(
                x_node, [self.node_weights, self.face_weights])
        else:
            # Distinct channel slices: two separate (still fused-weight) calls.
            (out_node,) = _from_cartesian_project(x_node, [self.node_weights])
            (out_face,) = _from_cartesian_project(x_face, [self.face_weights])
        return out_node, out_face


def _reference(x, node_w, face_w, slices=(slice(None), slice(None))):
    xn = x[..., slices[0], :, :].astype(jnp.float32)
    xf = x[..., slices[1], :, :].astype(jnp.float32)
    out_node = jnp.einsum("...chw,hwg->...cg", xn, node_w, precision="highest")
    out_face = jnp.einsum("...chw,hwg->...cg", xf, face_w, precision="highest")
    return out_node, out_face


if __name__ == "__main__":
    # Small deterministic shapes: batch B=2, channels C=4, spatial H=W=16,
    # node grid Gn=8, face grid Gf=6.
    B, C = 2, 4
    H, W = 16, 16
    Gn, Gf = 8, 6

    key = jax.random.PRNGKey(0)
    k1, k2, k3 = jax.random.split(key, 3)

    node_weights = jax.random.normal(k1, (H, W, Gn), dtype=jnp.float32)
    face_weights = jax.random.normal(k2, (H, W, Gf), dtype=jnp.float32)
    input_tensor = jax.random.normal(k3, (B, C, H, W), dtype=jnp.float32)

    layer = FromCartesianLayer(node_weights, face_weights)
    out_node, out_face = layer(input_tensor)
    out_node = jax.block_until_ready(out_node)
    out_face = jax.block_until_ready(out_face)

    ref_node, ref_face = _reference(input_tensor, node_weights, face_weights)
    assert out_node.shape == (B, C, Gn), out_node.shape
    assert out_face.shape == (B, C, Gf), out_face.shape
    assert jnp.allclose(out_node, ref_node, atol=2e-3, rtol=2e-3), "node mismatch"
    assert jnp.allclose(out_face, ref_face, atol=2e-3, rtol=2e-3), "face mismatch"

    print("KERNEL_OK")
</pallas_src>

<mosaic_0001>
module attributes {stable_mosaic.version = 11 : i64} {
  func.func @_projection_kernel(%arg0: i32, %arg1: i32, %arg2: memref<8x256xf32, #tpu.memory_space<vmem>>, %arg3: memref<256x14xf32, #tpu.memory_space<vmem>>, %arg4: memref<8x14xf32, #tpu.memory_space<vmem>>) attributes {dimension_semantics = [#tpu.dimension_semantics<parallel>, #tpu.dimension_semantics<arbitrary>], iteration_bounds = array<i64: 1, 1>, scalar_prefetch = 0 : i64, scratch_operands = 0 : i64, tpu.core_type = #tpu.core_type<tc>, window_params = [{transform_indices = @transform_0, window_bounds = array<i64: 8, 256>}, {transform_indices = @transform_1, window_bounds = array<i64: 256, 14>}, {transform_indices = @transform_2, window_bounds = array<i64: 8, 14>}]} {
    %c0 = arith.constant 0 : index
    %c0_0 = arith.constant 0 : index
    %0 = vector.load %arg2[%c0, %c0_0] : memref<8x256xf32, #tpu.memory_space<vmem>>, vector<8x256xf32>
    %c0_1 = arith.constant 0 : index
    %c0_2 = arith.constant 0 : index
    %1 = vector.load %arg3[%c0_1, %c0_2] : memref<256x14xf32, #tpu.memory_space<vmem>>, vector<256x14xf32>
    %cst = arith.constant dense<0.000000e+00> : vector<8x14xf32>
    %2 = tpu.matmul %0, %1, %cst {dimension_numbers = #tpu.dot_dimension_numbers<[1], [0], [0], [1], [0, 0, 1, 1], [], []>} : vector<8x256xf32>, vector<256x14xf32>, vector<8x14xf32> -> vector<8x14xf32>
    %c0_i32 = arith.constant 0 : i32
    %3 = arith.cmpi eq, %arg1, %c0_i32 : i32
    %4 = arith.extui %3 : i1 to i32
    %c0_i32_3 = arith.constant 0 : i32
    %5 = arith.cmpi ne, %4, %c0_i32_3 : i32
    scf.if %5 {
      %c0_6 = arith.constant 0 : index
      %c0_7 = arith.constant 0 : index
      %9 = vector.load %arg4[%c0_6, %c0_7] : memref<8x14xf32, #tpu.memory_space<vmem>>, vector<8x14xf32>
      tpu.vector_store %arg4[%c0_6, %c0_7], %2 {strides = array<i32>} : memref<8x14xf32, #tpu.memory_space<vmem>>, vector<8x14xf32>,
    } else {
    }
    %c0_i32_4 = arith.constant 0 : i32
    %6 = arith.cmpi sgt, %arg1, %c0_i32_4 : i32
    %7 = arith.extui %6 : i1 to i32
    %c0_i32_5 = arith.constant 0 : i32
    %8 = arith.cmpi ne, %7, %c0_i32_5 : i32
    scf.if %8 {
      %c0_6 = arith.constant 0 : index
      %c0_7 = arith.constant 0 : index
      %9 = vector.load %arg4[%c0_6, %c0_7] : memref<8x14xf32, #tpu.memory_space<vmem>>, vector<8x14xf32>
      %10 = arith.addf %9, %2 : vector<8x14xf32>
      %c0_8 = arith.constant 0 : index
      %c0_9 = arith.constant 0 : index
      %11 = vector.load %arg4[%c0_8, %c0_9] : memref<8x14xf32, #tpu.memory_space<vmem>>, vector<8x14xf32>
      tpu.vector_store %arg4[%c0_8, %c0_9], %10 {strides = array<i32>} : memref<8x14xf32, #tpu.memory_space<vmem>>, vector<8x14xf32>,
    } else {
    }
    return
  }
  func.func @transform_0(%arg0: i32, %arg1: i32) -> (i32, i32) {
    %c0_i32 = arith.constant 0 : i32
    return %arg0, %arg1 : i32, i32
  }
  func.func @transform_1(%arg0: i32, %arg1: i32) -> (i32, i32) {
    %c0_i32 = arith.constant 0 : i32
    %c0_i32_0 = arith.constant 0 : i32
    return %arg1, %c0_i32 : i32, i32
  }
  func.func @transform_2(%arg0: i32, %arg1: i32) -> (i32, i32) {
    %c0_i32 = arith.constant 0 : i32
    %c0_i32_0 = arith.constant 0 : i32
    return %arg0, %c0_i32 : i32, i32
  }
}

</mosaic_0001>

<bundles_post_ra>
// kernel: tpu_custom_call.1
= control target key start
LH: loop header
LB: loop body
LE: loop exit
PB: predicated region body
PF: predicated region fallthrough
CT: control target
= control target key end

     0   :  { %s366_s0 = inlined_call_operand.vmem [shape: f32[8,256], index: 0, kind: input, shape index: {}]   ;;  %s367_s1 = inlined_call_operand.vmem [shape: f32[256,14], index: 1, kind: input, shape index: {}]   ;;  %s368_s2 = inlined_call_operand.hbm [shape: f32[8,14], index: 2, kind: output, shape index: {}]  }
   0x1   :  { %v30_v0 = vld [vmem:[%s367_s1 + $0x80] sm:$0xff]  ;;  %v31_v1 = vld [vmem:[%s367_s1 + $0x88] sm:$0xff]  ;;  %v32_v5 = vld [vmem:[%s367_s1 + $0x90] sm:$0xff] }
   0x2   :  { %v14_v2 = vld [vmem:[%s367_s1] sm:$0xff]  ;;  %v179_v3 = vpack.c.bf16 %v31_v1, %v30_v0  ;;  %v15_v4 = vld [vmem:[%s367_s1 + $0x8] sm:$0xff]  ;;  %v33_v6 = vld [vmem:[%s367_s1 + $0x98] sm:$0xff] }
   0x3   :  { %v181_v7 = vpack.c.bf16 %v15_v4, %v14_v2  ;;  %v183_v8 = vpack.c.bf16 %v33_v6, %v32_v5  ;;  %v16_v9 = vld [vmem:[%s367_s1 + $0x10] sm:$0xff]  ;;  %v17_v10 = vld [vmem:[%s367_s1 + $0x18] sm:$0xff]  ;;  %v34_v11 = vld [vmem:[%s367_s1 + $0xa0] sm:$0xff] }
   0x4   :  { %180 = vmatprep.subr.bf16.mxu0 %v179_v3  ;;  %v35_v12 = vld [vmem:[%s367_s1 + $0xa8] sm:$0xff]  ;;  %v185_v13 = vpack.c.bf16 %v17_v10, %v16_v9  ;;  %v18_v15 = vld [vmem:[%s367_s1 + $0x20] sm:$0xff]  ;;  %v36_v17 = vld [vmem:[%s367_s1 + $0xb0] sm:$0xff] }
   0x5   :  { %182 = vmatpush3.bf16.msra.mxu0 %v181_v7  ;;  %v187_v14 = vpack.c.bf16 %v35_v12, %v34_v11  ;;  %v19_v16 = vld [vmem:[%s367_s1 + $0x28] sm:$0xff]  ;;  %v37_v18 = vld [vmem:[%s367_s1 + $0xb8] sm:$0xff]  ;;  %v20_v21 = vld [vmem:[%s367_s1 + $0x30] sm:$0xff] }
   0x6   :  { %184 = vmatprep.subr.bf16.mxu0 %v183_v8  ;;  %v189_v19 = vpack.c.bf16 %v19_v16, %v18_v15  ;;  %v191_v20 = vpack.c.bf16 %v37_v18, %v36_v17  ;;  %v21_v22 = vld [vmem:[%s367_s1 + $0x38] sm:$0xff]  ;;  %v38_v23 = vld [vmem:[%s367_s1 + $0xc0] sm:$0xff]  ;;  %v39_v24 = vld [vmem:[%s367_s1 + $0xc8] sm:$0xff] }
   0x7   :  { %v13_v25 = vld [vmem:[%s366_s0 + $0x8] sm:$0xff] }
   0x8   :  { %110 = vmatprep.mubr.f32.mxu0 %v13_v25 }
   0x9   :  { %186 = vmatpush3.bf16.msra.mxu0 %v185_v13 }
   0xa   :  { %188 = vmatprep.subr.bf16.mxu0 %v187_v14 }
   0xb   :  { %7 = vsyncpa [#allocation3], 0  ;;  %v193_v26 = vpack.c.bf16 %v21_v22, %v20_v21  ;;  %v195_v27 = vpack.c.bf16 %v39_v24, %v38_v23  ;;  %v22_v28 = vld [vmem:[%s367_s1 + $0x40] sm:$0xff]  ;;  %v23_v29 = vld [vmem:[%s367_s1 + $0x48] sm:$0xff]  ;;  %s236_s21 = smov [#allocation2]   ;;  %vm120_vm0 = vcmask 113664  }
   0xc   :  { %v40_v30 = vld [vmem:[%s367_s1 + $0xd0] sm:$0xff]  ;;  %v41_v31 = vld [vmem:[%s367_s1 + $0xd8] sm:$0xff]  ;;  %v197_v32 = vpack.c.bf16 %v23_v29, %v22_v28  ;;  %v42_v36 = vld [vmem:[%s367_s1 + $0xe0] sm:$0xff]  ;;  %s136_s22 = sshll.u32 %s236_s21, 4  ;;  %s137_s22 = int_to_ptr.vmem [resolvable:$true] %s136_s22 }
   0xd   :  { %190 = vmatpush3.bf16.msra.mxu0 %v189_v19  ;;  %v199_v33 = vpack.c.bf16 %v41_v31, %v40_v30  ;;  %v24_v34 = vld [vmem:[%s367_s1 + $0x50] sm:$0xff]  ;;  %v25_v35 = vld [vmem:[%s367_s1 + $0x58] sm:$0xff]  ;;  %v43_v37 = vld [vmem:[%s367_s1 + $0xe8] sm:$0xff]  ;;  %s212_s23 = scalar_lea.vmem %s137_s22, 128  ;;  %p217_p1 = scmp.lt.s32.totalorder %s137_s22, %s137_s22 }
   0xe   :  { %192 = vmatprep.subr.bf16.mxu0 %v191_v20  ;;  %v201_v38 = vpack.c.bf16 %v25_v35, %v24_v34  ;;  %v203_v39 = vpack.c.bf16 %v43_v37, %v42_v36  ;;  %v26_v40 = vld [vmem:[%s367_s1 + $0x60] sm:$0xff]  ;;  %v27_v41 = vld [vmem:[%s367_s1 + $0x68] sm:$0xff]  ;;  %v44_v42 = vld [vmem:[%s367_s1 + $0xf0] sm:$0xff]  ;;  %p213_p0 = scmp.ne.s32.totalorder %s137_s22, %s212_s23  ;;  %p218_p2 = scmp.lt.s32.totalorder %s212_s23, %s212_s23 }
   0xf   :  { %v45_v43 = vld [vmem:[%s367_s1 + $0xf8] sm:$0xff]  ;;  %v205_v44 = vpack.c.bf16 %v27_v41, %v26_v40  ;;  %v28_v46 = vld [vmem:[%s367_s1 + $0x70] sm:$0xff]  ;;  %v12_v49 = vld [vmem:[%s366_s0] sm:$0xff] }
  0x10   :  { %v207_v45 = vpack.c.bf16 %v45_v43, %v44_v42  ;;  %v29_v47 = vld [vmem:[%s367_s1 + $0x78] sm:$0xff]  ;;  %p219_p3 = por %p218_p2, %p217_p1 }
  0x11   :  { %194 = vmatpush3.bf16.msra.mxu0 %v193_v26  ;;  %v209_v48 = vpack.c.bf16 %v29_v47, %v28_v46 }
  0x12   :  { %196 = vmatprep.subr.bf16.mxu0 %v195_v27  ;;  %p220_p4 = pnand %p219_p3, %p213_p0 }
  0x15   :  { %198 = vmatpush3.bf16.msra.mxu0 %v197_v32 }
  0x16   :  { %200 = vmatprep.subr.bf16.mxu0 %v199_v33 }
  0x19   :  { %202 = vmatpush3.bf16.msra.mxu0 %v201_v38 }
  0x1a   :  { %204 = vmatprep.subr.bf16.mxu0 %v203_v39 }
  0x1d   :  { %206 = vmatpush3.bf16.msra.mxu0 %v205_v44 }
  0x1e   :  { %208 = vmatprep.subr.bf16.mxu0 %v207_v45 }
  0x21   :  { %210 = vmatpush3.bf16.msra.mxu0 %v209_v48 }
  0x24   :  { %111 = vmatmul.mubr.f32.vlgmr.msra.gmra.mrb[0].mxu0 %v12_v49 }
  0xf7   :  { %v176_v50 = vpop.f32.mrb[0].mxu0 }
  0xf8   :  { %v177_v51 = vpop.f32.mrb[1].mxu0 }
  0xf9   :  { %v178_v52 = vadd.f32 %v177_v51, %v176_v50 }
  0xfb   :  { %121 = vst.msk [vmem:[#allocation2] sm:$0xff] %vm120_vm0, %v178_v52 }
  0xfc   :  { %223 = shalt.err (!%p220_p4)
}
  0xfd   :  { %s224_s0 = scalar_lea.hbm %s368_s2, 128 }
  0xfe   :  { %p225_p5 = scmp.ne.s32.totalorder %s368_s2, %s224_s0  ;;  %p228_p6 = scmp.lt.u32.totalorder %s224_s0, %s368_s2 }
 0x100   :  { %p230_p7 = pnand %p228_p6, %p225_p5 }
 0x102   :  { %233 = shalt.err (!%p230_p7)
}
 0x103   :  { %139 = dma.vmem_to_hbm [thread:$0]  %s137_s22, 128, %s368_s2, [#allocation3]  }
 0x104   :  { %234 = dma.done.wait [#allocation3], 128  }
 0x105   :  { %235 = vsyncadd [#allocation3], 4294967168 }
 0x106   :  { %143 = vsyncpa [#allocation3], 1 }

</bundles_post_ra>
